<compile_context>
chip_gen: v7x
topology: tpu7x:2x2x1
jax: 0.10.0
libtpu: 0.0.40
codegen_flags: <defaults>
</compile_context>

<pallas_src>
import jax
import jax.numpy as jnp
from jax.experimental import pallas as pl
from jax.experimental.pallas import tpu as pltpu


def deepnn_kernel(x_ref,
                  w1_ref, b1_ref,
                  w2_ref, b2_ref,
                  w3_ref, b3_ref,
                  w4_ref, b4_ref,
                  w5_ref, b5_ref,
                  o_ref):
    # bf16 MXU matmuls with f32 accumulation; bias/ReLU/sigmoid epilogue in f32.
    # (astype is a no-op if the caller already supplies bf16 activations.)
    h = x_ref[...].astype(jnp.bfloat16)

    h = jnp.dot(h, w1_ref[...], preferred_element_type=jnp.float32) + b1_ref[...]
    h = jnp.maximum(h, 0.0).astype(jnp.bfloat16)

    h = jnp.dot(h, w2_ref[...], preferred_element_type=jnp.float32) + b2_ref[...]
    h = jnp.maximum(h, 0.0).astype(jnp.bfloat16)

    h = jnp.dot(h, w3_ref[...], preferred_element_type=jnp.float32) + b3_ref[...]
    h = jnp.maximum(h, 0.0).astype(jnp.bfloat16)

    h = jnp.dot(h, w4_ref[...], preferred_element_type=jnp.float32) + b4_ref[...]
    h = jnp.maximum(h, 0.0).astype(jnp.bfloat16)

    z = jnp.dot(h, w5_ref[...], preferred_element_type=jnp.float32) + b5_ref[...]
    # Only the first output column is real; store a lane-narrow (tb, 1) block so
    # the HBM writeback is 4 B/row instead of 512 B/row.
    o_ref[...] = jax.nn.sigmoid(z[:, :1])


def _fold_bn_into_linear(w, b, gamma, beta, mu, var, eps=1e-5):
    """Fold eval-mode BatchNorm1d into the preceding Linear (exact)."""
    scale = gamma / jnp.sqrt(var + eps)
    shift = beta - mu * scale
    return w * scale[None, :], b * scale + shift


def _round_up(n, m):
    return ((n + m - 1) // m) * m


def deepnn_forward(x, params, *, block_rows=1024):
    """x: (B, F) float32 or bfloat16.  Returns (B, 1) float32 probabilities."""
    B, F = x.shape

    # ---- fold BN into Linear and pad layer widths to lane-dense sizes -------
    # Real widths  : [F, 256, 128, 64, 32,  1]
    # Padded widths: [F, 256, 128, 128, 128, 128]  (exact: zero rows/cols)
    dims_pad = [F, 256, 128, 128, 128, 128]

    ws, bs = [], []
    for layer in range(1, 6):
        w = params[f"w{layer}"]
        b = params[f"b{layer}"]
        if layer <= 4:
            w, b = _fold_bn_into_linear(
                w, b,
                params[f"g{layer}"], params[f"be{layer}"],
                params[f"mu{layer}"], params[f"var{layer}"])
        k_pad, n_pad = dims_pad[layer - 1], dims_pad[layer]
        w = jnp.pad(w, ((0, k_pad - w.shape[0]), (0, n_pad - w.shape[1])))
        b = jnp.pad(b, ((0, n_pad - b.shape[0]),))
        ws.append(w.astype(jnp.bfloat16))          # MXU operands, half the DMA
        bs.append(b.reshape(1, -1).astype(jnp.float32))  # f32 epilogue

    # ---- batch tiling (no jnp.pad of x; Pallas masks the ragged last tile) --
    tb = min(block_rows, _round_up(B, 8))
    if B >= 16:
        # Guarantee >= 2 grid tiles so v7x's second TensorCore gets work.
        tb = min(tb, _round_up(pl.cdiv(B, 2), 8))
    tb = _round_up(tb, 8)
    n_tiles = pl.cdiv(B, tb)

    def batch_map(i):
        return (i, 0)

    def const_map(i):
        return (0, 0)

    in_specs = [pl.BlockSpec((tb, F), batch_map)]          # activations: batch-tiled
    args = [x]
    for w, b in zip(ws, bs):
        in_specs.append(pl.BlockSpec(w.shape, const_map))  # weights: VMEM-resident
        in_specs.append(pl.BlockSpec(b.shape, const_map))  # biases:  VMEM-resident
        args.append(w)
        args.append(b)

    # Advisory cost estimate (helps XLA overlap this call inside larger graphs).
    flops = 2 * B * sum(int(w.shape[0]) * int(w.shape[1]) for w in ws)
    bytes_accessed = (B * F * jnp.dtype(x.dtype).itemsize      # x read
                      + B * 4                                   # (B, 1) f32 output
                      + sum(int(w.size) * 2 for w in ws)        # bf16 weights
                      + sum(int(b.size) * 4 for b in bs))       # f32 biases
    cost = pl.CostEstimate(flops=flops, transcendentals=B,
                           bytes_accessed=bytes_accessed)

    out = pl.pallas_call(
        deepnn_kernel,
        out_shape=jax.ShapeDtypeStruct((B, 1), jnp.float32),
        grid=(n_tiles,),
        in_specs=in_specs,
        out_specs=pl.BlockSpec((tb, 1), batch_map),
        cost_estimate=cost,
        compiler_params=pltpu.CompilerParams(
            dimension_semantics=("parallel",),
            vmem_limit_bytes=32 * 1024 * 1024),
    )(*args)

    return out


def init_params(key, input_dim):
    dims = [input_dim, 256, 128, 64, 32, 1]
    params = {}
    keys = jax.random.split(key, 32)
    ki = 0
    for layer in range(1, 6):
        fan_in, fan_out = dims[layer - 1], dims[layer]
        bound = 1.0 / jnp.sqrt(fan_in)
        params[f"w{layer}"] = jax.random.uniform(
            keys[ki], (fan_in, fan_out), jnp.float32, -bound, bound); ki += 1
        params[f"b{layer}"] = jax.random.uniform(
            keys[ki], (fan_out,), jnp.float32, -bound, bound); ki += 1
    for layer in range(1, 5):
        n = dims[layer]
        params[f"g{layer}"] = 1.0 + 0.1 * jax.random.normal(keys[ki], (n,), jnp.float32); ki += 1
        params[f"be{layer}"] = 0.1 * jax.random.normal(keys[ki], (n,), jnp.float32); ki += 1
        params[f"mu{layer}"] = 0.1 * jax.random.normal(keys[ki], (n,), jnp.float32); ki += 1
        params[f"var{layer}"] = 1.0 + 0.1 * jax.random.uniform(keys[ki], (n,), jnp.float32); ki += 1
    return params


def reference_forward(x, params):
    """Pure-JAX f32 reference (eval-mode: dropout identity, BN running stats)."""
    eps = 1e-5
    h = x
    for layer in range(1, 5):
        h = h @ params[f"w{layer}"] + params[f"b{layer}"]
        scale = params[f"g{layer}"] / jnp.sqrt(params[f"var{layer}"] + eps)
        shift = params[f"be{layer}"] - params[f"mu{layer}"] * scale
        h = jnp.maximum(h * scale + shift, 0.0)
    z = h @ params["w5"] + params["b5"]
    return jax.nn.sigmoid(z)


if __name__ == "__main__":
    key = jax.random.PRNGKey(0)
    kx, kp = jax.random.split(key)

    input_dim = 48  # synthetic post-preprocessing feature width
    params = init_params(kp, input_dim)

    # Small batch: single tile.
    batch = 8
    x = jax.random.uniform(kx, (batch, input_dim), jnp.float32)  # MinMaxScaled-like
    out = jax.block_until_ready(deepnn_forward(x, params))
    ref = reference_forward(x, params)
    assert out.shape == (batch, 1)
    # bf16 matmul operands (f32 accumulate) -> loose tolerance vs f32 reference.
    assert jnp.allclose(out, ref, atol=2e-2, rtol=2e-2), "mismatch (small batch)"

    # Multi-tile grid with small row tile + ragged last tile (200 = 3*64 + 8).
    batch2 = 200
    x2 = jax.random.uniform(jax.random.PRNGKey(1), (batch2, input_dim), jnp.float32)
    out2 = jax.block_until_ready(deepnn_forward(x2, params, block_rows=64))
    ref2 = reference_forward(x2, params)
    assert out2.shape == (batch2, 1)
    assert jnp.allclose(out2, ref2, atol=2e-2, rtol=2e-2), "mismatch (tiled batch)"

    # Default tile size: exercises the >=2-tile split (tb=104, 2 tiles) and the
    # masked partial last block without any wrapper-side padding.
    out3 = jax.block_until_ready(deepnn_forward(x2, params))
    assert out3.shape == (batch2, 1)
    assert jnp.allclose(out3, ref2, atol=2e-2, rtol=2e-2), "mismatch (default tile)"

    print("KERNEL_OK")
</pallas_src>

<mosaic_0001>
module attributes {stable_mosaic.version = 11 : i64} {
  func.func @deepnn_kernel(%arg0: i32, %arg1: memref<8x48xf32, #tpu.memory_space<vmem>>, %arg2: memref<48x256xbf16, #tpu.memory_space<vmem>>, %arg3: memref<1x256xf32, #tpu.memory_space<vmem>>, %arg4: memref<256x128xbf16, #tpu.memory_space<vmem>>, %arg5: memref<1x128xf32, #tpu.memory_space<vmem>>, %arg6: memref<128x128xbf16, #tpu.memory_space<vmem>>, %arg7: memref<1x128xf32, #tpu.memory_space<vmem>>, %arg8: memref<128x128xbf16, #tpu.memory_space<vmem>>, %arg9: memref<1x128xf32, #tpu.memory_space<vmem>>, %arg10: memref<128x128xbf16, #tpu.memory_space<vmem>>, %arg11: memref<1x128xf32, #tpu.memory_space<vmem>>, %arg12: memref<8x1xf32, #tpu.memory_space<vmem>>) attributes {dimension_semantics = [#tpu.dimension_semantics<parallel>], iteration_bounds = array<i64: 1>, scalar_prefetch = 0 : i64, scratch_operands = 0 : i64, tpu.core_type = #tpu.core_type<tc>, window_params = [{transform_indices = @transform_0, window_bounds = array<i64: 8, 48>}, {pipeline_mode = #tpu.pipeline_mode<synchronous>, transform_indices = @transform_1, window_bounds = array<i64: 48, 256>}, {pipeline_mode = #tpu.pipeline_mode<synchronous>, transform_indices = @transform_2, window_bounds = array<i64: 1, 256>}, {pipeline_mode = #tpu.pipeline_mode<synchronous>, transform_indices = @transform_3, window_bounds = array<i64: 256, 128>}, {pipeline_mode = #tpu.pipeline_mode<synchronous>, transform_indices = @transform_4, window_bounds = array<i64: 1, 128>}, {pipeline_mode = #tpu.pipeline_mode<synchronous>, transform_indices = @transform_5, window_bounds = array<i64: 128, 128>}, {pipeline_mode = #tpu.pipeline_mode<synchronous>, transform_indices = @transform_6, window_bounds = array<i64: 1, 128>}, {pipeline_mode = #tpu.pipeline_mode<synchronous>, transform_indices = @transform_7, window_bounds = array<i64: 128, 128>}, {pipeline_mode = #tpu.pipeline_mode<synchronous>, transform_indices = @transform_8, window_bounds = array<i64: 1, 128>}, {pipeline_mode = #tpu.pipeline_mode<synchronous>, transform_indices = @transform_9, window_bounds = array<i64: 128, 128>}, {pipeline_mode = #tpu.pipeline_mode<synchronous>, transform_indices = @transform_10, window_bounds = array<i64: 1, 128>}, {transform_indices = @transform_11, window_bounds = array<i64: 8, 1>}]} {
    %c0 = arith.constant 0 : index
    %c0_0 = arith.constant 0 : index
    %0 = vector.load %arg1[%c0, %c0_0] : memref<8x48xf32, #tpu.memory_space<vmem>>, vector<8x48xf32>
    %1 = arith.truncf %0 : vector<8x48xf32> to vector<8x48xbf16>
    %c0_1 = arith.constant 0 : index
    %c0_2 = arith.constant 0 : index
    %2 = vector.load %arg2[%c0_1, %c0_2] : memref<48x256xbf16, #tpu.memory_space<vmem>>, vector<48x256xbf16>
    %cst = arith.constant dense<0.000000e+00> : vector<8x256xf32>
    %3 = tpu.matmul %1, %2, %cst {dimension_numbers = #tpu.dot_dimension_numbers<[1], [0], [0], [1], [0, 0, 1, 1], [], []>} : vector<8x48xbf16>, vector<48x256xbf16>, vector<8x256xf32> -> vector<8x256xf32>
    %c0_3 = arith.constant 0 : index
    %c0_4 = arith.constant 0 : index
    %4 = vector.load %arg3[%c0_3, %c0_4] : memref<1x256xf32, #tpu.memory_space<vmem>>, vector<1x256xf32>
    %5 = vector.broadcast %4 : vector<1x256xf32> to vector<8x256xf32>
    %6 = arith.addf %3, %5 : vector<8x256xf32>
    %cst_5 = arith.constant 0.000000e+00 : f32
    %7 = vector.broadcast %cst_5 : f32 to vector<8x256xf32>
    %8 = arith.maximumf %6, %7 : vector<8x256xf32>
    %9 = arith.truncf %8 : vector<8x256xf32> to vector<8x256xbf16>
    %c0_6 = arith.constant 0 : index
    %c0_7 = arith.constant 0 : index
    %10 = vector.load %arg4[%c0_6, %c0_7] : memref<256x128xbf16, #tpu.memory_space<vmem>>, vector<256x128xbf16>
    %cst_8 = arith.constant dense<0.000000e+00> : vector<8x128xf32>
    %11 = tpu.matmul %9, %10, %cst_8 {dimension_numbers = #tpu.dot_dimension_numbers<[1], [0], [0], [1], [0, 0, 1, 1], [], []>} : vector<8x256xbf16>, vector<256x128xbf16>, vector<8x128xf32> -> vector<8x128xf32>
    %c0_9 = arith.constant 0 : index
    %c0_10 = arith.constant 0 : index
    %12 = vector.load %arg5[%c0_9, %c0_10] : memref<1x128xf32, #tpu.memory_space<vmem>>, vector<1x128xf32>
    %13 = vector.broadcast %12 : vector<1x128xf32> to vector<8x128xf32>
    %14 = arith.addf %11, %13 : vector<8x128xf32>
    %cst_11 = arith.constant 0.000000e+00 : f32
    %15 = vector.broadcast %cst_11 : f32 to vector<8x128xf32>
    %16 = arith.maximumf %14, %15 : vector<8x128xf32>
    %17 = arith.truncf %16 : vector<8x128xf32> to vector<8x128xbf16>
    %c0_12 = arith.constant 0 : index
    %c0_13 = arith.constant 0 : index
    %18 = vector.load %arg6[%c0_12, %c0_13] : memref<128x128xbf16, #tpu.memory_space<vmem>>, vector<128x128xbf16>
    %cst_14 = arith.constant dense<0.000000e+00> : vector<8x128xf32>
    %19 = tpu.matmul %17, %18, %cst_14 {dimension_numbers = #tpu.dot_dimension_numbers<[1], [0], [0], [1], [0, 0, 1, 1], [], []>} : vector<8x128xbf16>, vector<128x128xbf16>, vector<8x128xf32> -> vector<8x128xf32>
    %c0_15 = arith.constant 0 : index
    %c0_16 = arith.constant 0 : index
    %20 = vector.load %arg7[%c0_15, %c0_16] : memref<1x128xf32, #tpu.memory_space<vmem>>, vector<1x128xf32>
    %21 = vector.broadcast %20 : vector<1x128xf32> to vector<8x128xf32>
    %22 = arith.addf %19, %21 : vector<8x128xf32>
    %cst_17 = arith.constant 0.000000e+00 : f32
    %23 = vector.broadcast %cst_17 : f32 to vector<8x128xf32>
    %24 = arith.maximumf %22, %23 : vector<8x128xf32>
    %25 = arith.truncf %24 : vector<8x128xf32> to vector<8x128xbf16>
    %c0_18 = arith.constant 0 : index
    %c0_19 = arith.constant 0 : index
    %26 = vector.load %arg8[%c0_18, %c0_19] : memref<128x128xbf16, #tpu.memory_space<vmem>>, vector<128x128xbf16>
    %cst_20 = arith.constant dense<0.000000e+00> : vector<8x128xf32>
    %27 = tpu.matmul %25, %26, %cst_20 {dimension_numbers = #tpu.dot_dimension_numbers<[1], [0], [0], [1], [0, 0, 1, 1], [], []>} : vector<8x128xbf16>, vector<128x128xbf16>, vector<8x128xf32> -> vector<8x128xf32>
    %c0_21 = arith.constant 0 : index
    %c0_22 = arith.constant 0 : index
    %28 = vector.load %arg9[%c0_21, %c0_22] : memref<1x128xf32, #tpu.memory_space<vmem>>, vector<1x128xf32>
    %29 = vector.broadcast %28 : vector<1x128xf32> to vector<8x128xf32>
    %30 = arith.addf %27, %29 : vector<8x128xf32>
    %cst_23 = arith.constant 0.000000e+00 : f32
    %31 = vector.broadcast %cst_23 : f32 to vector<8x128xf32>
    %32 = arith.maximumf %30, %31 : vector<8x128xf32>
    %33 = arith.truncf %32 : vector<8x128xf32> to vector<8x128xbf16>
    %c0_24 = arith.constant 0 : index
    %c0_25 = arith.constant 0 : index
    %34 = vector.load %arg10[%c0_24, %c0_25] : memref<128x128xbf16, #tpu.memory_space<vmem>>, vector<128x128xbf16>
    %cst_26 = arith.constant dense<0.000000e+00> : vector<8x128xf32>
    %35 = tpu.matmul %33, %34, %cst_26 {dimension_numbers = #tpu.dot_dimension_numbers<[1], [0], [0], [1], [0, 0, 1, 1], [], []>} : vector<8x128xbf16>, vector<128x128xbf16>, vector<8x128xf32> -> vector<8x128xf32>
    %c0_27 = arith.constant 0 : index
    %c0_28 = arith.constant 0 : index
    %36 = vector.load %arg11[%c0_27, %c0_28] : memref<1x128xf32, #tpu.memory_space<vmem>>, vector<1x128xf32>
    %37 = vector.broadcast %36 : vector<1x128xf32> to vector<8x128xf32>
    %38 = arith.addf %35, %37 : vector<8x128xf32>
    %39 = vector.extract_strided_slice %38 {offsets = [0, 0], sizes = [8, 1], strides = [1, 1]} : vector<8x128xf32> to vector<8x1xf32>
    %40 = arith.negf %39 : vector<8x1xf32>
    %41 = math.exp %40 : vector<8x1xf32>
    %cst_29 = arith.constant 1.000000e+00 : f32
    %42 = vector.broadcast %cst_29 : f32 to vector<8x1xf32>
    %43 = arith.addf %42, %41 : vector<8x1xf32>
    %44 = arith.divf %42, %43 : vector<8x1xf32>
    %c0_30 = arith.constant 0 : index
    %c0_31 = arith.constant 0 : index
    %45 = vector.load %arg12[%c0_30, %c0_31] : memref<8x1xf32, #tpu.memory_space<vmem>>, vector<8x1xf32>
    tpu.vector_store %arg12[%c0_30, %c0_31], %44 {strides = array<i32>} : memref<8x1xf32, #tpu.memory_space<vmem>>, vector<8x1xf32>,
    return
  }
  func.func @transform_0(%arg0: i32) -> (i32, i32) {
    %c0_i32 = arith.constant 0 : i32
    %c0_i32_0 = arith.constant 0 : i32
    return %arg0, %c0_i32 : i32, i32
  }
  func.func @transform_1(%arg0: i32) -> (i32, i32) {
    %c0_i32 = arith.constant 0 : i32
    %c0_i32_0 = arith.constant 0 : i32
    %c0_i32_1 = arith.constant 0 : i32
    return %c0_i32, %c0_i32_0 : i32, i32
  }
  func.func @transform_2(%arg0: i32) -> (i32, i32) {
    %c0_i32 = arith.constant 0 : i32
    %c0_i32_0 = arith.constant 0 : i32
    %c0_i32_1 = arith.constant 0 : i32
    return %c0_i32, %c0_i32_0 : i32, i32
  }
  func.func @transform_3(%arg0: i32) -> (i32, i32) {
    %c0_i32 = arith.constant 0 : i32
    %c0_i32_0 = arith.constant 0 : i32
    %c0_i32_1 = arith.constant 0 : i32
    return %c0_i32, %c0_i32_0 : i32, i32
  }
  func.func @transform_4(%arg0: i32) -> (i32, i32) {
    %c0_i32 = arith.constant 0 : i32
    %c0_i32_0 = arith.constant 0 : i32
    %c0_i32_1 = arith.constant 0 : i32
    return %c0_i32, %c0_i32_0 : i32, i32
  }
  func.func @transform_5(%arg0: i32) -> (i32, i32) {
    %c0_i32 = arith.constant 0 : i32
    %c0_i32_0 = arith.constant 0 : i32
    %c0_i32_1 = arith.constant 0 : i32
    return %c0_i32, %c0_i32_0 : i32, i32
  }
  func.func @transform_6(%arg0: i32) -> (i32, i32) {
    %c0_i32 = arith.constant 0 : i32
    %c0_i32_0 = arith.constant 0 : i32
    %c0_i32_1 = arith.constant 0 : i32
    return %c0_i32, %c0_i32_0 : i32, i32
  }
  func.func @transform_7(%arg0: i32) -> (i32, i32) {
    %c0_i32 = arith.constant 0 : i32
    %c0_i32_0 = arith.constant 0 : i32
    %c0_i32_1 = arith.constant 0 : i32
    return %c0_i32, %c0_i32_0 : i32, i32
  }
  func.func @transform_8(%arg0: i32) -> (i32, i32) {
    %c0_i32 = arith.constant 0 : i32
    %c0_i32_0 = arith.constant 0 : i32
    %c0_i32_1 = arith.constant 0 : i32
    return %c0_i32, %c0_i32_0 : i32, i32
  }
  func.func @transform_9(%arg0: i32) -> (i32, i32) {
    %c0_i32 = arith.constant 0 : i32
    %c0_i32_0 = arith.constant 0 : i32
    %c0_i32_1 = arith.constant 0 : i32
    return %c0_i32, %c0_i32_0 : i32, i32
  }
  func.func @transform_10(%arg0: i32) -> (i32, i32) {
    %c0_i32 = arith.constant 0 : i32
    %c0_i32_0 = arith.constant 0 : i32
    %c0_i32_1 = arith.constant 0 : i32
    return %c0_i32, %c0_i32_0 : i32, i32
  }
  func.func @transform_11(%arg0: i32) -> (i32, i32) {
    %c0_i32 = arith.constant 0 : i32
    %c0_i32_0 = arith.constant 0 : i32
    return %arg0, %c0_i32 : i32, i32
  }
}

</mosaic_0001>

<bundles_post_ra>
// kernel: tpu_custom_call.1
= control target key start
LH: loop header
LB: loop body
LE: loop exit
PB: predicated region body
PF: predicated region fallthrough
CT: control target
= control target key end

     0   :  { %16 = vsyncpa [#allocation3], 0  ;;  %s1320_s0 = inlined_call_operand.hbm [shape: f32[8,48], index: 0, kind: input, shape index: {}]   ;;  %s1321_s1 = inlined_call_operand.hbm [shape: bf16[48,256], index: 1, kind: input, shape index: {}]   ;;  %s1322_s2 = inlined_call_operand.vmem [shape: f32[1,256], index: 2, kind: input, shape index: {}]   ;;  %s1323_s3 = inlined_call_operand.hbm [shape: bf16[256,128], index: 3, kind: input, shape index: {}]   ;;  %s1324_s4 = inlined_call_operand.vmem [shape: f32[1,128], index: 4, kind: input, shape index: {}]   ;;  %s1325_s5 = inlined_call_operand.hbm [shape: bf16[128,128], index: 5, kind: input, shape index: {}]   ;;  %s1326_s6 = inlined_call_operand.vmem [shape: f32[1,128], index: 6, kind: input, shape index: {}]   ;;  %s1327_s7 = inlined_call_operand.hbm [shape: bf16[128,128], index: 7, kind: input, shape index: {}]   ;;  %s1328_s8 = inlined_call_operand.vmem [shape: f32[1,128], index: 8, kind: input, shape index: {}]   ;;  %s1329_s9 = inlined_call_operand.hbm [shape: bf16[128,128], index: 9, kind: input, shape index: {}]   ;;  %s1330_s10 = inlined_call_operand.vmem [shape: f32[1,128], index: 10, kind: input, shape index: {}]   ;;  %s1331_s11 = inlined_call_operand.vmem [shape: f32[8,1], index: 11, kind: output, shape index: {}]  }
   0x1   :  { %17 = vsyncpa [#allocation5], 0 }
   0x2   :  { %18 = vsyncpa [#allocation8], 0 }
   0x3   :  { %19 = vsyncpa [#allocation11], 0  ;;  %s1115_s17 = smov [#allocation4]   ;;  %s975_s21 = scalar_lea.hbm %s1321_s1, 768 }
   0x4   :  { %s35_s18 = sshll.u32 %s1115_s17, 4  ;;  %p976_p0 = scmp.ne.s32.totalorder %s1321_s1, %s975_s21  ;;  %s36_s18 = int_to_ptr.vmem [resolvable:$true] %s35_s18 }
   0x5   :  { %p979_p1 = scmp.lt.u32.totalorder %s975_s21, %s1321_s1 }
   0x7   :  { %p981_p2 = pnand %p979_p1, %p976_p0 }
   0x9   :  { %984 = shalt.err (!%p981_p2)
}
   0xa   :  { %s985_s26 = scalar_lea.vmem %s36_s18, 768  ;;  %p990_p4 = scmp.lt.s32.totalorder %s36_s18, %s36_s18 }
   0xb   :  { %p986_p3 = scmp.ne.s32.totalorder %s36_s18, %s985_s26  ;;  %p991_p5 = scmp.lt.s32.totalorder %s985_s26, %s985_s26 }
   0xd   :  { %p992_p6 = por %p991_p5, %p990_p4 }
   0xf   :  { %p993_p7 = pnand %p992_p6, %p986_p3 }
  0x11   :  { %996 = shalt.err (!%p993_p7)
}
  0x12   :  { %s1116_s27 = smov 128   ;;  %s1117_s28 = smov 8  }
  0x13   :  { %41 = dma.hbm_to_vmem [thread:$0]  %s1321_s1, 768, %s36_s18, [#allocation5], %s1116_s27, %s1116_s27, %s1117_s28  }
  0x14   :  { %s1118_s12 = smov [#allocation7]   ;;  %s1119_s14 = smov [#allocation2]  }
  0x15   :  { %s63_s13 = sshll.u32 %s1118_s12, 4  ;;  %s26_s15 = sshll.u32 %s1119_s14, 4  ;;  %s64_s13 = int_to_ptr.vmem [resolvable:$true] %s63_s13  ;;  %s27_s15 = int_to_ptr.vmem [resolvable:$true] %s26_s15 }
  0x16   :  { %s997_s19 = scalar_lea.hbm %s1325_s5, 1024 }
  0x17   :  { %p998_p8 = scmp.ne.s32.totalorder %s1325_s5, %s997_s19  ;;  %p1001_p9 = scmp.lt.u32.totalorder %s997_s19, %s1325_s5 }
  0x19   :  { %p1003_p10 = pnand %p1001_p9, %p998_p8 }
  0x1b   :  { %1006 = shalt.err (!%p1003_p10)
}
  0x1c   :  { %s1007_s1 = scalar_lea.vmem %s64_s13, 1024  ;;  %p1012_p12 = scmp.lt.s32.totalorder %s64_s13, %s64_s13 }
  0x1d   :  { %p1008_p11 = scmp.ne.s32.totalorder %s64_s13, %s1007_s1  ;;  %p1013_p13 = scmp.lt.s32.totalorder %s1007_s1, %s1007_s1 }
  0x1f   :  { %p1014_p0 = por %p1013_p13, %p1012_p12 }
  0x21   :  { %p1015_p1 = pnand %p1014_p0, %p1008_p11 }
  0x23   :  { %1018 = shalt.err (!%p1015_p1)
}
  0x24   :  { %s1120_s18 = smov 64   ;;  %s1121_s24 = smov 4  }
  0x25   :  { %69 = dma.hbm_to_vmem [thread:$0]  %s1325_s5, 1024, %s64_s13, [#allocation8], %s1120_s18, %s1120_s18, %s1121_s24  }
  0x26   :  { %s1019_s29 = scalar_lea.hbm %s1320_s0, 128 }
  0x27   :  { %p1020_p2 = scmp.ne.s32.totalorder %s1320_s0, %s1019_s29  ;;  %p1023_p3 = scmp.lt.u32.totalorder %s1019_s29, %s1320_s0 }
  0x29   :  { %p1025_p4 = pnand %p1023_p3, %p1020_p2 }
  0x2b   :  { %1028 = shalt.err (!%p1025_p4)
}
  0x2c   :  { %s1029_s17 = scalar_lea.vmem %s27_s15, 128  ;;  %p1034_p6 = scmp.lt.s32.totalorder %s27_s15, %s27_s15 }
  0x2d   :  { %p1030_p5 = scmp.ne.s32.totalorder %s27_s15, %s1029_s17  ;;  %p1035_p7 = scmp.lt.s32.totalorder %s1029_s17, %s1029_s17 }
  0x2f   :  { %p1036_p8 = por %p1035_p7, %p1034_p6 }
  0x31   :  { %p1037_p9 = pnand %p1036_p8, %p1030_p5 }
  0x33   :  { %1040 = shalt.err (!%p1037_p9)
}
  0x34   :  { %29 = dma.hbm_to_vmem [thread:$0]  %s1320_s0, 128, %s27_s15, [#allocation3]  }
  0x35   :  { %s1122_s19 = smov [#allocation6]   ;;  %s1123_s21 = smov [#allocation9]  }
  0x36   :  { %s49_s20 = sshll.u32 %s1122_s19, 4  ;;  %s77_s22 = sshll.u32 %s1123_s21, 4  ;;  %s50_s20 = int_to_ptr.vmem [resolvable:$true] %s49_s20  ;;  %s78_s22 = int_to_ptr.vmem [resolvable:$true] %s77_s22 }
  0x37   :  { %s1041_s25 = scalar_lea.hbm %s1323_s3, 2048 }
  0x38   :  { %p1042_p10 = scmp.ne.s32.totalorder %s1323_s3, %s1041_s25  ;;  %p1045_p11 = scmp.lt.u32.totalorder %s1041_s25, %s1323_s3 }
  0x3a   :  { %p1047_p12 = pnand %p1045_p11, %p1042_p10 }
  0x3c   :  { %1050 = shalt.err (!%p1047_p12)
}
  0x3d   :  { %s1051_s0 = scalar_lea.vmem %s50_s20, 2048  ;;  %p1056_p0 = scmp.lt.s32.totalorder %s50_s20, %s50_s20 }
  0x3e   :  { %p1052_p13 = scmp.ne.s32.totalorder %s50_s20, %s1051_s0  ;;  %p1057_p1 = scmp.lt.s32.totalorder %s1051_s0, %s1051_s0 }
  0x40   :  { %p1058_p2 = por %p1057_p1, %p1056_p0 }
  0x42   :  { %p1059_p3 = pnand %p1058_p2, %p1052_p13 }
  0x44   :  { %1062 = shalt.err (!%p1059_p3)
}
  0x45   :  { %55 = dma.hbm_to_vmem [thread:$0]  %s1323_s3, 2048, %s50_s20, [#allocation5], %s1120_s18, %s1120_s18, %s1121_s24  }
  0x46   :  { %s1063_s16 = scalar_lea.hbm %s1327_s7, 1024 }
  0x47   :  { %p1064_p4 = scmp.ne.s32.totalorder %s1327_s7, %s1063_s16  ;;  %p1067_p5 = scmp.lt.u32.totalorder %s1063_s16, %s1327_s7 }
  0x49   :  { %p1069_p6 = pnand %p1067_p5, %p1064_p4 }
  0x4b   :  { %1072 = shalt.err (!%p1069_p6)
}
  0x4c   :  { %s1073_s21 = scalar_lea.vmem %s78_s22, 1024  ;;  %p1078_p8 = scmp.lt.s32.totalorder %s78_s22, %s78_s22 }
  0x4d   :  { %p1074_p7 = scmp.ne.s32.totalorder %s78_s22, %s1073_s21  ;;  %p1079_p9 = scmp.lt.s32.totalorder %s1073_s21, %s1073_s21 }
  0x4f   :  { %p1080_p10 = por %p1079_p9, %p1078_p8 }
  0x51   :  { %p1081_p11 = pnand %p1080_p10, %p1074_p7 }
  0x53   :  { %1084 = shalt.err (!%p1081_p11)
}
  0x54   :  { %83 = dma.hbm_to_vmem [thread:$0]  %s1327_s7, 1024, %s78_s22, [#allocation8], %s1120_s18, %s1120_s18, %s1121_s24  }
  0x55   :  { %s1124_s23 = smov [#allocation10]   ;;  %s1085_s27 = scalar_lea.hbm %s1329_s9, 1024 }
  0x56   :  { %s91_s1 = sshll.u32 %s1124_s23, 4  ;;  %p1086_p12 = scmp.ne.s32.totalorder %s1329_s9, %s1085_s27  ;;  %s92_s1 = int_to_ptr.vmem [resolvable:$true] %s91_s1 }
  0x57   :  { %p1089_p13 = scmp.lt.u32.totalorder %s1085_s27, %s1329_s9 }
  0x59   :  { %p1091_p0 = pnand %p1089_p13, %p1086_p12 }
  0x5b   :  { %1094 = shalt.err (!%p1091_p0)
}
  0x5c   :  { %s1095_s30 = scalar_lea.vmem %s92_s1, 1024  ;;  %p1100_p2 = scmp.lt.s32.totalorder %s92_s1, %s92_s1 }
  0x5d   :  { %p1096_p1 = scmp.ne.s32.totalorder %s92_s1, %s1095_s30  ;;  %p1101_p3 = scmp.lt.s32.totalorder %s1095_s30, %s1095_s30 }
  0x5f   :  { %p1102_p4 = por %p1101_p3, %p1100_p2 }
  0x61   :  { %p1103_p5 = pnand %p1102_p4, %p1096_p1 }
  0x63   :  { %1106 = shalt.err (!%p1103_p5)
}
  0x64   :  { %97 = dma.hbm_to_vmem [thread:$0]  %s1329_s9, 1024, %s92_s1, [#allocation11], %s1120_s18, %s1120_s18, %s1121_s24  }
  0x65   :  { %1107 = dma.done.wait [#allocation3], 128  }
  0x66   :  { %1108 = vsyncadd [#allocation3], 4294967168 }
  0x67   :  { %1109 = dma.done.wait [#allocation5], 2816  }
  0x68   :  { %1110 = vsyncadd [#allocation5], 4294964480 }
  0x69   :  { %1111 = dma.done.wait [#allocation8], 2048  }
  0x6a   :  { %1112 = vsyncadd [#allocation8], 4294965248 }
  0x6b   :  { %1113 = dma.done.wait [#allocation11], 1024  }
  0x6c   :  { %1114 = vsyncadd [#allocation11], 4294966272  ;;  %v1125_v0 = vmov 0   ;;  %v922_v1 = vld [vmem:[#allocation4 + $0x4] ss:$8 sps:$4 sm:$0xff]   ;;  %v119_v7 = vld [vmem:[#allocation2] sm:$0xff]  ;;  %v129_v32 = vlaneseq }
  0x6d   :  { %205 = vmatprep.mubr.bf16.mxu0 %v1125_v0  ;;  %v924_v2 = vld [vmem:[#allocation4] ss:$8 sps:$4 sm:$0xff]   ;;  %173 = vmatprep.subr.bf16.mxu0 %v922_v1  ;;  %v925_v3 = vld [vmem:[#allocation4 + $0x14] ss:$8 sps:$4 sm:$0xff]   ;;  %v927_v4 = vld [vmem:[#allocation4 + $0x10] ss:$8 sps:$4 sm:$0xff]   ;;  %v120_v13 = vpack.c.bf16 %v119_v7, %v119_v7 }
  0x6e   :  { %174 = vmatpush1.bf16.msra.mxu0 %v924_v2  ;;  %v928_v5 = vld [vmem:[#allocation4 + $0x24] ss:$8 sps:$4 sm:$0xff]   ;;  %v930_v6 = vld [vmem:[#allocation4 + $0x20] ss:$8 sps:$4 sm:$0xff]   ;;  %v931_v8 = vld [vmem:[#allocation6 + $0x40] sm:$0xff]   ;;  %vm169_vm0 = vcmask 392192  }
  0x6f   :  { %175 = vmatprep.subr.bf16.mxu0 %v925_v3  ;;  %v932_v9 = vld [vmem:[#allocation6] sm:$0xff]   ;;  %800 = vmatprep.subr.bf16.mxu1 %v931_v8  ;;  %v933_v10 = vld [vmem:[#allocation6 + $0x48] sm:$0xff]   ;;  %v935_v12 = vld [vmem:[#allocation6 + $0x50] sm:$0xff]   ;;  %v1126_v26 = vmov 0.0   ;;  %v130_v33 = vshrl.u32 %v129_v32, 7  ;;  %vm1127_vm1 = vmmov 0  }
  0x70   :  { %801 = vmatpush3.bf16.msra.mxu1 %v932_v9  ;;  %v934_v11 = vld [vmem:[#allocation6 + $0x8] sm:$0xff]   ;;  %v936_v14 = vld [vmem:[#allocation6 + $0x10] sm:$0xff]   ;;  %v937_v15 = vld [vmem:[#allocation6 + $0x58] sm:$0xff]   ;;  %vm738_vm2 = vcmask 7168  }
  0x71   :  { %802 = vmatprep.subr.bf16.mxu1 %v933_v10  ;;  %v938_v16 = vld [vmem:[#allocation6 + $0x18] sm:$0xff]   ;;  %v939_v17 = vld [vmem:[#allocation6 + $0x60] sm:$0xff]   ;;  %v941_v19 = vld [vmem:[#allocation6 + $0x68] sm:$0xff]   ;;  %v131_v34 = vsub.s32 0, %v130_v33  ;;  %v135_v36 = vsub.s32 1, %v130_v33 }
  0x72   :  { %176 = vmatpush1.bf16.msra.mxu0 %v927_v4  ;;  %v940_v18 = vld [vmem:[#allocation6 + $0x20] sm:$0xff]   ;;  %v942_v20 = vld [vmem:[#allocation6 + $0x28] sm:$0xff]   ;;  %v943_v21 = vld [vmem:[#allocation6 + $0x70] sm:$0xff]  }
  0x73   :  { %177 = vmatprep.subr.bf16.mxu0 %v928_v5  ;;  %v944_v22 = vld [vmem:[#allocation6 + $0x30] sm:$0xff]   ;;  %v945_v23 = vld [vmem:[#allocation6 + $0x78] sm:$0xff]   ;;  %v947_v25 = vld [vmem:[#allocation7] sm:$0xff]  }
  0x74   :  { %803 = vmatpush3.bf16.msra.mxu1 %v934_v11  ;;  %v946_v24 = vld [vmem:[#allocation6 + $0x38] sm:$0xff]   ;;  %v948_v27 = vld [vmem:[#allocation7 + $0x8] sm:$0xff]   ;;  %v949_v28 = vld [vmem:[#allocation7 + $0x10] sm:$0xff]  }
  0x75   :  { %804 = vmatprep.subr.bf16.mxu1 %v935_v12  ;;  %v950_v29 = vld [vmem:[#allocation7 + $0x18] sm:$0xff]   ;;  %v951_v30 = vld [vmem:[#allocation7 + $0x20] sm:$0xff]   ;;  %v952_v31 = vld [vmem:[#allocation7 + $0x28] sm:$0xff]  }
  0x76   :  { %178 = vmatpush1.bf16.msra.mxu0 %v930_v6  ;;  %v127_v35 = vld [vmem:[%s1322_s2] sm:$0x3]  ;;  %v953_v49 = vld [vmem:[#allocation7 + $0x30] sm:$0xff]   ;;  %v954_v50 = vld [vmem:[#allocation7 + $0x38] sm:$0xff]  }
  0x77   :  { %849 = vmatprep.subr.bf16.mxu0 %v1126_v26  ;;  %v132_v37 = vrot.slane %v127_v35, %v131_v34  ;;  %v136_v38 = vrot.slane %v127_v35, %v135_v36  ;;  %v955_v51 = vld [vmem:[#allocation9] sm:$0xff]   ;;  %v956_v52 = vld [vmem:[#allocation9 + $0x8] sm:$0xff]   ;;  %v957_v53 = vld [vmem:[#allocation9 + $0x10] sm:$0xff]  }
  0x78   :  { %805 = vmatpush3.bf16.msra.mxu1 %v936_v14  ;;  %v958_v54 = vld [vmem:[#allocation9 + $0x18] sm:$0xff]   ;;  %v959_v55 = vld [vmem:[#allocation9 + $0x20] sm:$0xff]   ;;  %v960_v56 = vld [vmem:[#allocation9 + $0x28] sm:$0xff]  }
  0x79   :  { %754 = vmatmul.mubr.msk.bf16.vlgmr.msra.gmra.mrb[0].mxu0 %vm169_vm0, %v120_v13  ;;  %806 = vmatprep.subr.bf16.mxu1 %v937_v15  ;;  %v755_v58 = vld [vmem:[%s1324_s4] ss:$0 sm:$0xff]  ;;  %v961_v2 = vld [vmem:[#allocation9 + $0x30] sm:$0xff]   ;;  %v962_v3 = vld [vmem:[#allocation9 + $0x38] sm:$0xff]  }
  0x7a   :  { %850 = vmatpush3.bf16.msra.mxu0 %v947_v25  ;;  %865 = vmatprep.mubr.msk.bf16.mxu0 %vm1127_vm1, %v1126_v26  ;;  %v963_v4 = vld [vmem:[#allocation10] sm:$0xff]   ;;  %v964_v5 = vld [vmem:[#allocation10 + $0x8] sm:$0xff]   ;;  %v965_v6 = vld [vmem:[#allocation10 + $0x10] sm:$0xff]  }
  0x7b   :  { %851 = vmatprep.subr.bf16.mxu0 %v1126_v26  ;;  %v966_v7 = vld [vmem:[#allocation10 + $0x18] sm:$0xff]   ;;  %v967_v8 = vld [vmem:[#allocation10 + $0x20] sm:$0xff]   ;;  %v968_v9 = vld [vmem:[#allocation10 + $0x28] sm:$0xff]  }
  0x7c   :  { %807 = vmatpush3.bf16.msra.mxu1 %v938_v16  ;;  %v772_v10 = vld [vmem:[%s1326_s6] ss:$0 sm:$0xff] }
  0x7d   :  { %808 = vmatprep.subr.bf16.mxu1 %v939_v17 }
  0x7e   :  { %852 = vmatpush3.bf16.msra.mxu0 %v948_v27 }
  0x7f   :  { %853 = vmatprep.subr.bf16.mxu0 %v1126_v26 }
  0x80   :  { %809 = vmatpush3.bf16.msra.mxu1 %v940_v18  ;;  %v969_v18 = vld [vmem:[#allocation10 + $0x30] sm:$0xff]  }
  0x81   :  { %810 = vmatprep.subr.bf16.mxu1 %v941_v19  ;;  %v970_v19 = vld [vmem:[#allocation10 + $0x38] sm:$0xff]  }
  0x82   :  { %854 = vmatpush3.bf16.msra.mxu0 %v949_v28 }
  0x83   :  { %855 = vmatprep.subr.bf16.mxu0 %v1126_v26 }
  0x84   :  { %811 = vmatpush3.bf16.msra.mxu1 %v942_v20  ;;  %v781_v20 = vld [vmem:[%s1328_s8] ss:$0 sm:$0xff] }
  0x85   :  { %812 = vmatprep.subr.bf16.mxu1 %v943_v21 }
  0x86   :  { %856 = vmatpush3.bf16.msra.mxu0 %v950_v29  ;;  %v790_v29 = vld [vmem:[%s1330_s10] ss:$0 sm:$0xff] }
  0x87   :  { %857 = vmatprep.subr.bf16.mxu0 %v1126_v26 }
  0x88   :  { %813 = vmatpush3.bf16.msra.mxu1 %v944_v22 }
  0x89   :  { %814 = vmatprep.subr.bf16.mxu1 %v945_v23 }
  0x8a   :  { %858 = vmatpush3.bf16.msra.mxu0 %v951_v30 }
  0x8b   :  { %859 = vmatprep.subr.bf16.mxu0 %v1126_v26 }
  0x8c   :  { %815 = vmatpush3.bf16.msra.mxu1 %v946_v24 }
  0x8d   :  { %869 = vmatprep.subr.bf16.mxu1 %v1126_v26 }
  0x8e   :  { %860 = vmatpush3.bf16.msra.mxu0 %v952_v31 }
  0x8f   :  { %861 = vmatprep.subr.bf16.mxu0 %v1126_v26 }
  0x92   :  { %862 = vmatpush3.bf16.msra.mxu0 %v953_v49 }
  0x93   :  { %863 = vmatprep.subr.bf16.mxu0 %v1126_v26 }
  0x96   :  { %864 = vmatpush3.bf16.msra.mxu0 %v954_v50 }
  0x97   :  { %889 = vmatprep.subr.bf16.mxu0 %v1126_v26 }
 0x14c   :  { %v207_v39 = vpop.f32.mrb[0].mxu0 }
 0x14d   :  { %v208_v40 = vadd.f32 %v207_v39, %v132_v37  ;;  %v209_v41 = vpop.f32.mrb[1].mxu0 }
 0x14e   :  { %v210_v42 = vadd.f32 %v209_v41, %v136_v38  ;;  %v211_v43 = vpop.f32.mrb[2].mxu0 }
 0x14f   :  { %v214_v44 = vmax.f32 %v208_v40, 0.0  ;;  %v212_v45 = vpop.f32.mrb[3].mxu0 }
 0x150   :  { %v215_v46 = vmax.f32 %v210_v42, 0.0 }
 0x151   :  { %v216_v48 = vpack.c.bf16 %v214_v44, %v214_v44 }
 0x152   :  { %v217_v47 = vpack.c.bf16 %v215_v46, %v215_v46 }
 0x154   :  { %385 = vmatprep.mubr.bf16.mxu1 %v217_v47 }
 0x155   :  { %386 = vmatmul.mubr.bf16.vlgmr.msra.gmra.mrb[0].mxu1 %v216_v48 }
 0x156   :  { %885 = vmatprep.mubr.msk.bf16.mxu1 %vm1127_vm1, %v1126_v26  ;;  %870 = vmatpush3.bf16.msra.mxu1 %v955_v51 }
 0x157   :  { %871 = vmatprep.subr.bf16.mxu1 %v1126_v26 }
 0x15a   :  { %872 = vmatpush3.bf16.msra.mxu1 %v956_v52 }
 0x15b   :  { %873 = vmatprep.subr.bf16.mxu1 %v1126_v26 }
 0x15e   :  { %874 = vmatpush3.bf16.msra.mxu1 %v957_v53 }
 0x15f   :  { %875 = vmatprep.subr.bf16.mxu1 %v1126_v26 }
 0x162   :  { %876 = vmatpush3.bf16.msra.mxu1 %v958_v54 }
 0x163   :  { %877 = vmatprep.subr.bf16.mxu1 %v1126_v26 }
 0x166   :  { %878 = vmatpush3.bf16.msra.mxu1 %v959_v55 }
 0x167   :  { %879 = vmatprep.subr.bf16.mxu1 %v1126_v26 }
 0x16a   :  { %880 = vmatpush3.bf16.msra.mxu1 %v960_v56 }
 0x16b   :  { %881 = vmatprep.subr.bf16.mxu1 %v1126_v26 }
 0x16e   :  { %882 = vmatpush3.bf16.msra.mxu1 %v961_v2 }
 0x16f   :  { %883 = vmatprep.subr.bf16.mxu1 %v1126_v26 }
 0x172   :  { %884 = vmatpush3.bf16.msra.mxu1 %v962_v3 }
 0x228   :  { %v816_v57 = vpop.f32.mrb[0].mxu1 }
 0x229   :  { %v817_v59 = vpop.f32.mrb[1].mxu1 }
 0x22a   :  { %v818_v60 = vadd.f32 %v817_v59, %v816_v57  ;;  %v819_v61 = vpop.f32.mrb[2].mxu1 }
 0x22b   :  { %v820_v62 = vpop.f32.mrb[3].mxu1 }
 0x22c   :  { %v388_v63 = vadd.f32 %v818_v60, %v755_v58 }
 0x22e   :  { %v393_v0 = vmax.f32 %v388_v63, 0.0 }
 0x230   :  { %v394_v1 = vpack.c.bf16 %v393_v0, %v393_v0 }
 0x232   :  { %866 = vmatmul.mubr.bf16.vlgmr.msra.gmra.mrb[4].mxu0 %v394_v1 }
 0x233   :  { %905 = vmatprep.mubr.msk.bf16.mxu0 %vm1127_vm1, %v1126_v26  ;;  %890 = vmatpush3.bf16.msra.mxu0 %v963_v4 }
 0x234   :  { %891 = vmatprep.subr.bf16.mxu0 %v1126_v26 }
 0x237   :  { %892 = vmatpush3.bf16.msra.mxu0 %v964_v5 }
 0x238   :  { %893 = vmatprep.subr.bf16.mxu0 %v1126_v26 }
 0x23b   :  { %894 = vmatpush3.bf16.msra.mxu0 %v965_v6 }
 0x23c   :  { %895 = vmatprep.subr.bf16.mxu0 %v1126_v26 }
 0x23f   :  { %896 = vmatpush3.bf16.msra.mxu0 %v966_v7 }
 0x240   :  { %897 = vmatprep.subr.bf16.mxu0 %v1126_v26 }
 0x243   :  { %898 = vmatpush3.bf16.msra.mxu0 %v967_v8 }
 0x244   :  { %899 = vmatprep.subr.bf16.mxu0 %v1126_v26 }
 0x247   :  { %900 = vmatpush3.bf16.msra.mxu0 %v968_v9 }
 0x248   :  { %901 = vmatprep.subr.bf16.mxu0 %v1126_v26 }
 0x24b   :  { %902 = vmatpush3.bf16.msra.mxu0 %v969_v18 }
 0x24c   :  { %903 = vmatprep.subr.bf16.mxu0 %v1126_v26 }
 0x24f   :  { %904 = vmatpush3.bf16.msra.mxu0 %v970_v19 }
 0x305   :  { %v500_v11 = vpop.f32.mrb[4].mxu0 }
 0x306   :  { %v501_v12 = vadd.f32 %v772_v10, %v500_v11  ;;  %v867_v13 = vpop.f32.mrb[5].mxu0 }
 0x307   :  { %v503_v14 = vpop.f32.mrb[6].mxu0 }
 0x308   :  { %v506_v15 = vmax.f32 %v501_v12, 0.0  ;;  %v868_v16 = vpop.f32.mrb[7].mxu0 }
 0x30a   :  { %v507_v17 = vpack.c.bf16 %v506_v15, %v506_v15 }
 0x30c   :  { %886 = vmatmul.mubr.bf16.vlgmr.msra.gmra.mrb[4].mxu1 %v507_v17 }
 0x3df   :  { %v613_v21 = vpop.f32.mrb[4].mxu1 }
 0x3e0   :  { %v614_v22 = vadd.f32 %v781_v20, %v613_v21  ;;  %v887_v23 = vpop.f32.mrb[5].mxu1 }
 0x3e1   :  { %v616_v24 = vpop.f32.mrb[6].mxu1 }
 0x3e2   :  { %v619_v25 = vmax.f32 %v614_v22, 0.0  ;;  %v888_v27 = vpop.f32.mrb[7].mxu1 }
 0x3e4   :  { %v620_v28 = vpack.c.bf16 %v619_v25, %v619_v25 }
 0x3e6   :  { %906 = vmatmul.mubr.bf16.vlgmr.msra.gmra.mrb[8].mxu0 %v620_v28 }
 0x4b9   :  { %v726_v30 = vpop.f32.mrb[8].mxu0 }
 0x4ba   :  { %v727_v26 = vadd.f32 %v790_v29, %v726_v30  ;;  %v907_v31 = vpop.f32.mrb[9].mxu0 }
 0x4bb   :  { %v729_v32 = vpop.f32.mrb[10].mxu0 }
 0x4bc   :  { %v799_v33 = vmul.f32 -1.442695, %v727_v26  ;;  %v908_v34 = vpop.f32.mrb[11].mxu0 }
 0x4be   :  { %971 = vpow2.f32 %v799_v33 }
 0x4c8   :  { %v972_v35 = vpop.eup %971 }
 0x4c9   :  { %v735_v36 = vadd.f32 1.0, %v972_v35 }
 0x4cb   :  { %973 = vrcp.f32 %v735_v36 }
 0x4d5   :  { %v974_v37 = vpop.eup %973 }
 0x4d6   :  { %739 = vst.msk [vmem:[%s1331_s11] sm:$0xff] %vm738_vm2, %v974_v37 }
 0x4d7   :  { %744 = vsyncpa [#allocation3], 1 }
 0x4d8   :  { %745 = vsyncpa [#allocation5], 1 }
 0x4d9   :  { %746 = vsyncpa [#allocation8], 1 }
 0x4da   :  { %747 = vsyncpa [#allocation11], 1 }

</bundles_post_ra>
